<compile_context>
chip_gen: v5e
topology: v5e:2x2
jax: 0.10.0
libtpu: 0.0.40
codegen_flags: <defaults>
</compile_context>

<pallas_src>
from functools import partial

import numpy as np
import jax
import jax.numpy as jnp
from jax.experimental import pallas as pl
from jax.experimental.pallas import tpu as pltpu

EMBED_DIM = 768
PADDING_IDX = 1
LN_EPS = 1e-5


def get_stack_num(input_len, target_seq_len, embed_dim=EMBED_DIM):
    # Mirrors Embeddings1D.get_stack_num for embed_dim == 768.
    if embed_dim == 768:
        for i in range(1, input_len + 1):
            if input_len % i == 0 and input_len // i <= target_seq_len:
                return i
    else:
        for i in range(1, input_len + 1):
            root = np.sqrt(input_len // i)
            if (input_len % i == 0 and input_len // i <= target_seq_len
                    and (int(root + 0.5) ** 2 == input_len // i)):
                return i
    return input_len


def _choose_row_tile(b, seq, K, N, itemsize=4, max_rows=1024,
                     vmem_budget=12 * 1024 * 1024):
    """Pick tm = r*seq (r | b) rows per grid step.

    Preference order: fits a v5e-safe scoped-VMEM budget (double-buffered
    patches + output, resident weight/consts/pe), keeps >= 2 grid steps
    (so v7x megacore can shard the 'parallel' axis), stays at/below the
    ~1024-row sweet spot, then as large as possible.
    """
    resident = (K * N + 2 * N + seq * N) * itemsize
    best = None
    for r in range(1, b + 1):
        if b % r:
            continue
        tm = r * seq
        # Block sublane dim must be a multiple of 8 unless it spans the full array.
        if tm % 8 != 0 and r != b:
            continue
        pipelined = 2 * tm * (K + N) * itemsize     # double-buffered patches + out
        grid = b // r
        key = (int(pipelined + resident <= vmem_budget),
               int(grid >= 2),
               int(tm <= max_rows),
               tm)
        if best is None or key > best[0]:
            best = (key, tm, r)
    _, tm, r = best
    return tm, r


def _embed_kernel(patch_ref, w_ref, consts_ref, pe_ref, out_ref, *, reps, seq):
    # patch_ref: (tm, K)   w_ref: (K, N)
    # consts_ref: (2, N)   [0] = conv bias, [1] = LN gamma
    # pe_ref:    (seq, N)  position embeddings with LN beta pre-added
    # out_ref:   (tm, N),  tm == reps * seq
    y = jnp.dot(patch_ref[...], w_ref[...], preferred_element_type=jnp.float32)
    y = y + consts_ref[0:1, :]                       # conv bias (pre-LN)

    # One-pass LayerNorm statistics (PyTorch semantics: biased var, eps in sqrt).
    inv_n = 1.0 / y.shape[-1]
    s = jnp.sum(y, axis=-1, keepdims=True)
    s2 = jnp.sum(y * y, axis=-1, keepdims=True)
    mean = s * inv_n
    var = jnp.maximum(s2 * inv_n - mean * mean, 0.0)
    y = (y - mean) * jax.lax.rsqrt(var + LN_EPS)
    y = y * consts_ref[1:2, :]                        # LN gamma

    pe = pe_ref[...]                                  # (seq, N), beta folded in
    if reps == 1:
        out_ref[...] = y + pe
    elif seq % 8 == 0:
        # Rows repeat every `seq`; view the tile as (reps, seq, N) and broadcast.
        # seq % 8 == 0 keeps the reshape a layout no-op (no VMEM copy).
        n = y.shape[-1]
        out3 = y.reshape(reps, seq, n) + pe[None, :, :]
        out_ref[...] = out3.reshape(reps * seq, n)
    else:
        out_ref[...] = y + jnp.tile(pe, (reps, 1))    # layout-safe fallback


def embeddings1d_forward(x, conv_w, conv_b, ln_gamma, ln_beta, pos_table):
    """x: (b, c, l) float32.  Returns (b, seq, 768)."""
    b, c, l = x.shape
    out_ch, in_ch, stack = conv_w.shape
    assert in_ch == c and out_ch == EMBED_DIM and l % stack == 0
    seq = l // stack
    # Position ids run up to seq + PADDING_IDX; guard against silent gather clamp.
    assert seq + PADDING_IDX + 1 <= pos_table.shape[0], (
        "position ids exceed position_embeddings table")

    M = b * seq
    K = c * stack
    N = EMBED_DIM

    # --- glue -----------------------------------------------------------------
    # Conv1d with kernel==stride: out[b,o,s] = sum_{ci,k} w[o,ci,k] x[b,ci,s*stack+k]
    # (input rearrangement is K/N ~ 1% of HBM traffic; left to XLA.)
    patches = x.reshape(b, c, seq, stack).transpose(0, 2, 1, 3).reshape(M, K)
    w_mat = conv_w.reshape(EMBED_DIM, K).T                      # (K, N)

    # create_position_ids_from_inputs_embeds -> contiguous slice of the table;
    # fold LN beta in so it disappears as a kernel input.
    pe_beta = pos_table[PADDING_IDX + 1: PADDING_IDX + 1 + seq] + ln_beta[None, :]
    consts = jnp.stack([conv_b, ln_gamma], axis=0)              # (2, N)

    tm, reps = _choose_row_tile(b, seq, K, N)
    grid = M // tm

    out = pl.pallas_call(
        partial(_embed_kernel, reps=reps, seq=seq),
        out_shape=jax.ShapeDtypeStruct((M, N), jnp.float32),
        grid_spec=pltpu.PrefetchScalarGridSpec(
            num_scalar_prefetch=0,
            grid=(grid,),
            in_specs=[
                pl.BlockSpec((tm, K), lambda i: (i, 0)),    # patches
                pl.BlockSpec((K, N), lambda i: (0, 0)),     # conv weight (matmul form)
                pl.BlockSpec((2, N), lambda i: (0, 0)),     # [bias; gamma]
                pl.BlockSpec((seq, N), lambda i: (0, 0)),   # pe (+beta), reused per tile
            ],
            out_specs=pl.BlockSpec((tm, N), lambda i: (i, 0)),
        ),
        compiler_params=pltpu.CompilerParams(dimension_semantics=("parallel",)),
    )(patches, w_mat, consts, pe_beta)

    return out.reshape(b, seq, EMBED_DIM)


def reference_forward(x, conv_w, conv_b, ln_gamma, ln_beta, pos_table):
    b, c, l = x.shape
    stack = conv_w.shape[2]
    seq = l // stack
    patches = x.reshape(b, c, seq, stack).transpose(0, 2, 1, 3).reshape(b, seq, c * stack)
    y = patches @ conv_w.reshape(EMBED_DIM, c * stack).T + conv_b
    mean = y.mean(-1, keepdims=True)
    var = ((y - mean) ** 2).mean(-1, keepdims=True)
    y = (y - mean) / jnp.sqrt(var + LN_EPS) * ln_gamma + ln_beta
    pos_ids = jnp.arange(PADDING_IDX + 1, seq + PADDING_IDX + 1)
    return y + pos_table[pos_ids][None]


if __name__ == "__main__":
    # Small shapes consistent with the module's constructor: input_shape = (b, c, l),
    # embed_dim=768 forced by wrapper1D, target_seq_len chosen so positions
    # (2..seq+1) stay inside the embedding table.
    b, c, l = 2, 4, 96
    target_seq_len = 64
    stack_num = get_stack_num(l, target_seq_len)      # -> 2
    seq = l // stack_num                              # -> 48

    key = jax.random.PRNGKey(0)
    kx, kw, kb, kp = jax.random.split(key, 4)

    x = jax.random.normal(kx, (b, c, l), dtype=jnp.float32)
    # Deterministic synthetic parameters (conv_init / embedder_init are checkpoint-
    # dependent; drawn deterministically here).
    conv_w = jax.random.normal(kw, (EMBED_DIM, c, stack_num), dtype=jnp.float32) * 0.02
    conv_b = jax.random.normal(kb, (EMBED_DIM,), dtype=jnp.float32) * 0.02
    ln_gamma = jnp.ones((EMBED_DIM,), jnp.float32)    # nn.LayerNorm default init
    ln_beta = jnp.zeros((EMBED_DIM,), jnp.float32)
    pos_table = jax.random.normal(kp, (target_seq_len, EMBED_DIM), dtype=jnp.float32) * 0.02
    pos_table = pos_table.at[PADDING_IDX].set(0.0)    # nn.Embedding padding_idx row = 0

    out = embeddings1d_forward(x, conv_w, conv_b, ln_gamma, ln_beta, pos_table)
    out = jax.block_until_ready(out)

    ref = reference_forward(x, conv_w, conv_b, ln_gamma, ln_beta, pos_table)
    assert out.shape == (b, seq, EMBED_DIM), out.shape
    np.testing.assert_allclose(np.asarray(out), np.asarray(ref), rtol=1e-4, atol=1e-4)

    # TODO(synk): when wrapper1D.output_raw is False, the RoBERTa encoder + predictor
    # path (pretrained transformer) is not reproduced here.
    print("KERNEL_OK")
</pallas_src>

<mosaic_0001>
module attributes {stable_mosaic.version = 11 : i64} {
  func.func @_embed_kernel(%arg0: i32, %arg1: memref<48x8xf32, #tpu.memory_space<vmem>>, %arg2: memref<8x768xf32, #tpu.memory_space<vmem>>, %arg3: memref<2x768xf32, #tpu.memory_space<vmem>>, %arg4: memref<48x768xf32, #tpu.memory_space<vmem>>, %arg5: memref<48x768xf32, #tpu.memory_space<vmem>>) attributes {dimension_semantics = [#tpu.dimension_semantics<parallel>], iteration_bounds = array<i64: 2>, scalar_prefetch = 0 : i64, scratch_operands = 0 : i64, tpu.core_type = #tpu.core_type<tc>, window_params = [{transform_indices = @transform_0, window_bounds = array<i64: 48, 8>}, {pipeline_mode = #tpu.pipeline_mode<synchronous>, transform_indices = @transform_1, window_bounds = array<i64: 8, 768>}, {pipeline_mode = #tpu.pipeline_mode<synchronous>, transform_indices = @transform_2, window_bounds = array<i64: 2, 768>}, {pipeline_mode = #tpu.pipeline_mode<synchronous>, transform_indices = @transform_3, window_bounds = array<i64: 48, 768>}, {transform_indices = @transform_4, window_bounds = array<i64: 48, 768>}]} {
    %c0 = arith.constant 0 : index
    %c0_0 = arith.constant 0 : index
    %0 = vector.load %arg1[%c0, %c0_0] : memref<48x8xf32, #tpu.memory_space<vmem>>, vector<48x8xf32>
    %c0_1 = arith.constant 0 : index
    %c0_2 = arith.constant 0 : index
    %1 = vector.load %arg2[%c0_1, %c0_2] : memref<8x768xf32, #tpu.memory_space<vmem>>, vector<8x768xf32>
    %cst = arith.constant dense<0.000000e+00> : vector<48x768xf32>
    %2 = tpu.matmul %0, %1, %cst {dimension_numbers = #tpu.dot_dimension_numbers<[1], [0], [0], [1], [0, 0, 1, 1], [], []>} : vector<48x8xf32>, vector<8x768xf32>, vector<48x768xf32> -> vector<48x768xf32>
    %c0_3 = arith.constant 0 : index
    %c0_4 = arith.constant 0 : index
    %3 = vector.load %arg3[%c0_3, %c0_4] : memref<2x768xf32, #tpu.memory_space<vmem>>, vector<1x768xf32>
    %4 = vector.broadcast %3 : vector<1x768xf32> to vector<48x768xf32>
    %5 = arith.addf %2, %4 : vector<48x768xf32>
    %cst_5 = arith.constant dense<0.000000e+00> : vector<48xf32>
    %6 = vector.multi_reduction <add>, %5, %cst_5 [1] : vector<48x768xf32> to vector<48xf32>
    %7 = vector.shape_cast %6 : vector<48xf32> to vector<48x1xf32>
    %8 = arith.mulf %5, %5 : vector<48x768xf32>
    %cst_6 = arith.constant dense<0.000000e+00> : vector<48xf32>
    %9 = vector.multi_reduction <add>, %8, %cst_6 [1] : vector<48x768xf32> to vector<48xf32>
    %10 = vector.shape_cast %9 : vector<48xf32> to vector<48x1xf32>
    %cst_7 = arith.constant 0.00130208337 : f32
    %11 = vector.broadcast %cst_7 : f32 to vector<48x1xf32>
    %12 = arith.mulf %7, %11 : vector<48x1xf32>
    %cst_8 = arith.constant 0.00130208337 : f32
    %13 = vector.broadcast %cst_8 : f32 to vector<48x1xf32>
    %14 = arith.mulf %10, %13 : vector<48x1xf32>
    %15 = arith.mulf %12, %12 : vector<48x1xf32>
    %16 = arith.subf %14, %15 : vector<48x1xf32>
    %cst_9 = arith.constant 0.000000e+00 : f32
    %17 = vector.broadcast %cst_9 : f32 to vector<48x1xf32>
    %18 = arith.maximumf %16, %17 : vector<48x1xf32>
    %19 = vector.broadcast %12 : vector<48x1xf32> to vector<48x768xf32>
    %20 = arith.subf %5, %19 : vector<48x768xf32>
    %cst_10 = arith.constant 9.99999974E-6 : f32
    %21 = vector.broadcast %cst_10 : f32 to vector<48x1xf32>
    %22 = arith.addf %18, %21 : vector<48x1xf32>
    %23 = math.rsqrt %22 : vector<48x1xf32>
    %24 = vector.broadcast %23 : vector<48x1xf32> to vector<48x768xf32>
    %25 = arith.mulf %20, %24 : vector<48x768xf32>
    %c1 = arith.constant 1 : index
    %c0_11 = arith.constant 0 : index
    %26 = vector.load %arg3[%c1, %c0_11] : memref<2x768xf32, #tpu.memory_space<vmem>>, vector<1x768xf32>
    %27 = vector.broadcast %26 : vector<1x768xf32> to vector<48x768xf32>
    %28 = arith.mulf %25, %27 : vector<48x768xf32>
    %c0_12 = arith.constant 0 : index
    %c0_13 = arith.constant 0 : index
    %29 = vector.load %arg4[%c0_12, %c0_13] : memref<48x768xf32, #tpu.memory_space<vmem>>, vector<48x768xf32>
    %30 = arith.addf %28, %29 : vector<48x768xf32>
    %c0_14 = arith.constant 0 : index
    %c0_15 = arith.constant 0 : index
    %31 = vector.load %arg5[%c0_14, %c0_15] : memref<48x768xf32, #tpu.memory_space<vmem>>, vector<48x768xf32>
    tpu.vector_store %arg5[%c0_14, %c0_15], %30 {strides = array<i32>} : memref<48x768xf32, #tpu.memory_space<vmem>>, vector<48x768xf32>,
    return
  }
  func.func @transform_0(%arg0: i32) -> (i32, i32) {
    %c0_i32 = arith.constant 0 : i32
    %c0_i32_0 = arith.constant 0 : i32
    return %arg0, %c0_i32 : i32, i32
  }
  func.func @transform_1(%arg0: i32) -> (i32, i32) {
    %c0_i32 = arith.constant 0 : i32
    %c0_i32_0 = arith.constant 0 : i32
    %c0_i32_1 = arith.constant 0 : i32
    return %c0_i32, %c0_i32_0 : i32, i32
  }
  func.func @transform_2(%arg0: i32) -> (i32, i32) {
    %c0_i32 = arith.constant 0 : i32
    %c0_i32_0 = arith.constant 0 : i32
    %c0_i32_1 = arith.constant 0 : i32
    return %c0_i32, %c0_i32_0 : i32, i32
  }
  func.func @transform_3(%arg0: i32) -> (i32, i32) {
    %c0_i32 = arith.constant 0 : i32
    %c0_i32_0 = arith.constant 0 : i32
    %c0_i32_1 = arith.constant 0 : i32
    return %c0_i32, %c0_i32_0 : i32, i32
  }
  func.func @transform_4(%arg0: i32) -> (i32, i32) {
    %c0_i32 = arith.constant 0 : i32
    %c0_i32_0 = arith.constant 0 : i32
    return %arg0, %c0_i32 : i32, i32
  }
}

</mosaic_0001>

<bundles_post_ra>
// kernel: tpu_custom_call.1
= control target key start
LH: loop header
LB: loop body
LE: loop exit
PB: predicated region body
PF: predicated region fallthrough
CT: control target
= control target key end

     0   :  { %9 = vsyncpa [#allocation3], 0  ;;  %s1913_s0 = inlined_call_operand.vmem [shape: f32[96,8], index: 0, kind: input, shape index: {}]   ;;  %s1914_s1 = inlined_call_operand.vmem [shape: f32[8,768], index: 1, kind: input, shape index: {}]   ;;  %s1915_s2 = inlined_call_operand.vmem [shape: f32[2,768], index: 2, kind: input, shape index: {}]   ;;  %s1916_s3 = inlined_call_operand.hbm [shape: f32[48,768], index: 3, kind: input, shape index: {}]   ;;  %s1917_s4 = inlined_call_operand.hbm [shape: f32[96,768], index: 4, kind: output, shape index: {}]  }
   0x1   :  { %10 = vsyncpa [#allocation4], 0 }
   0x2   :  { %12 = vsyncpa [#allocation4 + $0x1], 0  ;;  %s1255_s15 = smov 0   ;;  %s1257_s16 = smov 0  }
   0x3   :  { %s1259_s17 = smov 0   ;;  %s1261_s18 = smov 0  }
   0x4 LB: > { %s1276_s19 = sadd.s32 4294967295, %s1223_s18   ;;  %s1009_s20 = sadd.s32 4294967294, %s1223_s18   ;;  %s1223_s18 = sphi %s1261_s18, %s1948_s18   ;;  %s1219_s17 = sphi %s1259_s17, %s1947_s17   ;;  %s1215_s16 = sphi %s1257_s16, %s1946_s16   ;;  %s1211_s15 = sphi %s1255_s15, %s1945_s15  }
   0x5   : > { %s1280_s21 = sadd.s32 1, %s1223_s18   ;;  %s114_s22 = sadd.s32 1, %s1219_s17 }
   0x6   : > { %s111_s23 = ssub.s32 %s1223_s18, %s1280_s21  ;;  %p124_p0 = scmp.ne.s32.totalorder %s1219_s17, %s1215_s16 }
   0x7   : > { %p112_p1 = scmp.eq.s32.totalorder %s111_s23, 0  ;;  %p125_p2 = scmp.eq.s32.totalorder %s1276_s19, 1 }
   0x8   : > { %p130_p3 = scmp.ne.s32.totalorder %s1215_s16, %s1211_s15  ;;  %p131_p4 = scmp.eq.s32.totalorder %s1009_s20, 1 }
   0x9   : > { %s1291_s24 = scalar_select %p112_p1, %s1219_s17, %s114_s22  }
   0xa   : > { %p1293_p5 = por %p125_p2, %p124_p0  ;;  %p1297_p6 = por %p131_p4, %p130_p3 }
   0xb   : > { %p1010_p7 = scmp.ge.s32.totalorder %s1223_s18, 1  ;;  %p138_p8 = scmp.lt.s32.totalorder %s1223_s18, 3 }
   0xc   : > { %p1074_p9 = scmp.eq.s32.totalorder %s1276_s19, 0  ;;  %s155_s29 = sshll.u32 %s1916_s3, 4  ;;  %s156_s29 = int_to_ptr.hbm [resolvable:$true] %s155_s29 }
   0xd   : > { %p139_p10 = pnand %p1010_p7, %p138_p8  ;;  %s1225_s30 = smov [#allocation2]  }
   0xe   : > { %s157_s5 = sshll.u32 %s1225_s30, 4  ;;  %s1226_s6 = smov 768   ;;  %s158_s5 = int_to_ptr.vmem [resolvable:$true] %s157_s5 }
   0xf   : > { %p1066_p11 = pneg %p139_p10  ;;  %s1227_s7 = smov 48  }
  0x10   : > { %182 = sbr.rel (%p139_p10) target bundleno = 413 (0x19d), region = 36 }
  0x11   : > { %p1067_p12 = pnand %p1074_p9, %p1066_p11 }
  0x13   : > { %1069 = dma.hbm_to_vmem [thread:$0]  (!%p1067_p12), %s156_s29, 4608, %s158_s5, [#allocation3], %s1226_s6, %s1226_s6, %s1227_s7  }
  0x15   : > { %1202 = dma.done.wait (%p1074_p9), [#allocation3], 4608  }
  0x16   : > { %1204 = vsyncadd (%p1074_p9), [#allocation3], 4294962688  ;;  %s209_s8 = smul.u32 6, %s1276_s19  ;;  %vm242_vm0 = vcmask 64512   ;;  %v222_v0 = vld [vmem:[%s1914_s1] sm:$0xff]  ;;  %v223_v1 = vld [vmem:[%s1914_s1 + $0x8] sm:$0xff] }
  0x17   : > { %v224_v2 = vld [vmem:[%s1914_s1 + $0x10] sm:$0xff]  ;;  %1056 = vmatpush.msra.mxu2 %v222_v0  ;;  %1057 = vmatpush.msra.mxu3 %v223_v1  ;;  %v225_v4 = vld [vmem:[%s1914_s1 + $0x18] sm:$0xff]  ;;  %v226_v6 = vld [vmem:[%s1914_s1 + $0x20] sm:$0xff]  ;;  %s206_s12 = sand.u32 1, %s1215_s16   ;;  %s1076_s20 = smul.u32 288, %s1276_s19 }
  0x18   : > { %p210_p13 = scmp.lt.s32.totalorder %s209_s8, 11  ;;  %v227_v7 = vld [vmem:[%s1914_s1 + $0x28] sm:$0xff]  ;;  %276 = vmatpush.msra.mxu0 %v222_v0  ;;  %311 = vmatpush.msra.mxu1 %v223_v1  ;;  %s1684_s13 = smul.u32 288, %s206_s12 }
  0x19   : > { %346 = vmatpush.msrb.mxu2 %v224_v2  ;;  %381 = vmatpush.msrb.mxu3 %v225_v4  ;;  %v228_v20 = vld [vmem:[%s1915_s2] ss:$2 sm:$0x3f]  ;;  %s931_s23 = scalar_lea.hbm %s1917_s4, %s1076_s20  ;;  %s919_s29 = scalar_lea.sflag [#allocation4], %s206_s12 }
  0x1a   : > { %s1950_s8 = smov (!%p210_p13, %s209_s8), 11  ;;  %416 = vmatpush.msrb.mxu0 %v226_v6  ;;  %451 = vmatpush.msrb.mxu1 %v227_v7  ;;  %v1382_v23 = vperm.slane %v228_v20, 0  ;;  %v1384_v24 = vperm.slane %v228_v20, 1  ;;  %v1396_v29 = vperm.slane %v228_v20, 2  ;;  %v1398_v30 = vperm.slane %v228_v20, 3  ;;  %s1710_s14 = scalar_lea.vmem [#allocation5], %s1684_s13 }
  0x1b   : > { %s1015_s9 = sshll.u32 %s1950_s8, 3  ;;  %v1404_v35 = vperm.slane %v228_v20, 4  ;;  %v1414_v41 = vperm.slane %v228_v20, 5  ;;  %s932_s27 = sshll.u32 %s1710_s14, 4  ;;  %s933_s27 = int_to_ptr.vmem [resolvable:$true] %s932_s27 }
  0x1c   : > { %s213_s22 = scalar_lea.vmem %s1913_s0, %s1015_s9  ;;  %s934_s28 = sshll.u32 %s931_s23, 4  ;;  %s935_s28 = int_to_ptr.hbm [resolvable:$true] %s934_s28 }
  0x1d   : > { %v219_v3 = vld [vmem:[%s213_s22 + $0x18] sm:$0xff]  ;;  %v216_v5 = vld [vmem:[%s213_s22] sm:$0xff]  ;;  %v217_v9 = vld [vmem:[%s213_s22 + $0x8] sm:$0xff]  ;;  %s1171_s30 = sshra.s32 %s935_s28, 4  ;;  %s1177_s8 = scalar_lea.hbm %s1917_s4, 576  ;;  %s1172_s30 = int_to_ptr.hbm [resolvable:$true] %s1171_s30 }
  0x1e   : > { %1019 = vmatmul.msk.f32.vlgmr.msra.gmra.mxu2 %vm242_vm0, %v219_v3  ;;  %1025 = vmatmul.msk.f32.vlgmr.msra.gmra.mxu3 %vm242_vm0, %v219_v3  ;;  %v220_v8 = vld [vmem:[%s213_s22 + $0x20] sm:$0xff]  ;;  %v221_v10 = vld [vmem:[%s213_s22 + $0x28] sm:$0xff]  ;;  %v218_v11 = vld [vmem:[%s213_s22 + $0x10] sm:$0xff]  ;;  %s1173_s5 = scalar_lea.hbm %s1172_s30, 288  ;;  %p1178_p3 = scmp.lt.s32.totalorder %s1172_s30, %s1917_s4 }
  0x1f   : > { %1016 = vmatmul.msk.f32.vlgmr.msra.gmra.mxu0 %vm242_vm0, %v216_v5  ;;  %1022 = vmatmul.msk.f32.vlgmr.msra.gmra.mxu1 %vm242_vm0, %v216_v5  ;;  %p1174_p0 = scmp.ne.s32.totalorder %s1172_s30, %s1173_s5  ;;  %p1179_p4 = scmp.lt.s32.totalorder %s1177_s8, %s1173_s5 }
  0x21   : > { %p1175_p1 = pnand %p1174_p0, %p1293_p5  ;;  %p1180_p7 = por %p1179_p4, %p1178_p3 }
  0x23   : > { %p1176_p2 = pneg %p1175_p1 }
  0x25   : > { %p1181_p8 = pnand %p1180_p7, %p1176_p2 }
  0x26   : > { %1020 = vmatmul.msk.f32.gmra.mxu2 %vm242_vm0, %v220_v8  ;;  %1026 = vmatmul.msk.f32.gmra.mxu3 %vm242_vm0, %v220_v8 }
  0x27   : > { %1017 = vmatmul.msk.f32.gmra.mxu0 %vm242_vm0, %v217_v9  ;;  %1023 = vmatmul.msk.f32.gmra.mxu1 %vm242_vm0, %v217_v9 }
  0x2e   : > { %1021 = vmatmul.msk.f32.gmra.mxu2 %vm242_vm0, %v221_v10  ;;  %1027 = vmatmul.msk.f32.gmra.mxu3 %vm242_vm0, %v221_v10 }
  0x2f   : > { %1018 = vmatmul.msk.f32.gmra.mxu0 %vm242_vm0, %v218_v11  ;;  %1024 = vmatmul.msk.f32.gmra.mxu1 %vm242_vm0, %v218_v11 }
  0x36   : > { %1028 = vmatmul.msk.f32.vlgmr.msrb.gmra.mxu2 %vm242_vm0, %v216_v5  ;;  %1034 = vmatmul.msk.f32.vlgmr.msrb.gmra.mxu3 %vm242_vm0, %v216_v5 }
  0x37   : > { %1040 = vmatmul.msk.f32.vlgmr.msrb.gmra.mxu0 %vm242_vm0, %v216_v5  ;;  %1046 = vmatmul.msk.f32.vlgmr.msrb.gmra.mxu1 %vm242_vm0, %v216_v5 }
  0x3e   : > { %1029 = vmatmul.msk.f32.gmra.mxu2 %vm242_vm0, %v217_v9  ;;  %1035 = vmatmul.msk.f32.gmra.mxu3 %vm242_vm0, %v217_v9 }
  0x3f   : > { %1041 = vmatmul.msk.f32.gmra.mxu0 %vm242_vm0, %v217_v9  ;;  %1047 = vmatmul.msk.f32.gmra.mxu1 %vm242_vm0, %v217_v9 }
  0x46   : > { %1030 = vmatmul.msk.f32.gmra.mxu2 %vm242_vm0, %v218_v11  ;;  %1036 = vmatmul.msk.f32.gmra.mxu3 %vm242_vm0, %v218_v11 }
  0x47   : > { %1042 = vmatmul.msk.f32.gmra.mxu0 %vm242_vm0, %v218_v11  ;;  %1048 = vmatmul.msk.f32.gmra.mxu1 %vm242_vm0, %v218_v11 }
  0x4e   : > { %1031 = vmatmul.msk.f32.gmra.mxu2 %vm242_vm0, %v219_v3  ;;  %1037 = vmatmul.msk.f32.gmra.mxu3 %vm242_vm0, %v219_v3 }
  0x4f   : > { %1043 = vmatmul.msk.f32.gmra.mxu0 %vm242_vm0, %v219_v3  ;;  %1049 = vmatmul.msk.f32.gmra.mxu1 %vm242_vm0, %v219_v3 }
  0x56   : > { %1032 = vmatmul.msk.f32.gmra.mxu2 %vm242_vm0, %v220_v8  ;;  %1038 = vmatmul.msk.f32.gmra.mxu3 %vm242_vm0, %v220_v8 }
  0x57   : > { %1044 = vmatmul.msk.f32.gmra.mxu0 %vm242_vm0, %v220_v8  ;;  %1050 = vmatmul.msk.f32.gmra.mxu1 %vm242_vm0, %v220_v8 }
  0x5e   : > { %1033 = vmatmul.msk.f32.gmra.mxu2 %vm242_vm0, %v221_v10  ;;  %1039 = vmatmul.msk.f32.gmra.mxu3 %vm242_vm0, %v221_v10 }
  0x5f   : > { %1045 = vmatmul.msk.f32.gmra.mxu0 %vm242_vm0, %v221_v10  ;;  %1051 = vmatmul.msk.f32.gmra.mxu1 %vm242_vm0, %v221_v10 }
  0x9c   : > { %v278_v12 = vpop.f32.mrf.mxu0  ;;  %v313_v13 = vpop.f32.mrf.mxu1 }
  0x9d   : > { %v1391_v27 = vadd.f32 %v278_v12, %v1382_v23  ;;  %v1394_v28 = vadd.f32 %v313_v13, %v1384_v24 }
  0x9f   : > { %v513_v33 = vmul.f32 %v1391_v27, %v1391_v27  ;;  %v514_v34 = vmul.f32 %v1394_v28, %v1394_v28  ;;  %v471_v38 = vadd.f32 %v1394_v28, %v1391_v27 }
  0xa1   : > { %v1371_v14 = vpop.f32.mrf.mxu2  ;;  %v1373_v15 = vpop.f32.mrf.mxu3  ;;  %v549_v42 = vadd.f32 %v514_v34, %v513_v33 }
  0xa4   : > { %v281_v16 = vpop.f32.mrf.mxu0  ;;  %v316_v17 = vpop.f32.mrf.mxu1 }
  0xa5   : > { %v1417_v43 = vadd.f32 %v281_v16, %v1382_v23  ;;  %v1420_v44 = vadd.f32 %v316_v17, %v1384_v24 }
  0xa7   : > { %v519_v54 = vmul.f32 %v1417_v43, %v1417_v43  ;;  %v520_v55 = vmul.f32 %v1420_v44, %v1420_v44  ;;  %v478_v1 = vadd.f32 %v1420_v44, %v1417_v43 }
  0xa9   : > { %v1375_v18 = vpop.f32.mrf.mxu2  ;;  %v1377_v19 = vpop.f32.mrf.mxu3  ;;  %v556_v4 = vadd.f32 %v520_v55, %v519_v54 }
  0xac   : > { %v284_v21 = vpop.f32.mrf.mxu0  ;;  %v319_v22 = vpop.f32.mrf.mxu1 }
  0xad   : > { %v1454_v2 = vadd.f32 %v284_v21, %v1382_v23  ;;  %v1457_v3 = vadd.f32 %v319_v22, %v1384_v24 }
  0xaf   : > { %v525_v17 = vmul.f32 %v1454_v2, %v1454_v2  ;;  %v526_v20 = vmul.f32 %v1457_v3, %v1457_v3 }
  0xb1   : > { %v1386_v25 = vpop.f32.mrf.mxu2  ;;  %v1388_v26 = vpop.f32.mrf.mxu3 }
  0xb4   : > { %v418_v31 = vpop.f32.mrf.mxu0  ;;  %v453_v32 = vpop.f32.mrf.mxu1 }
  0xb5   : > { %v1426_v47 = vadd.f32 %v418_v31, %v1404_v35  ;;  %v1431_v50 = vadd.f32 %v453_v32, %v1414_v41  ;;  %v485_v31 = vadd.f32 %v1457_v3, %v1454_v2 }
  0xb7   : > { %v517_v57 = vmul.f32 %v1426_v47, %v1426_v47  ;;  %v518_v9 = vmul.f32 %v1431_v50, %v1431_v50 }
  0xb9   : > { %v348_v36 = vpop.f32.mrf.mxu2  ;;  %v383_v37 = vpop.f32.mrf.mxu3 }
  0xba   : > { %v1409_v39 = vadd.f32 %v348_v36, %v1396_v29  ;;  %v1412_v40 = vadd.f32 %v383_v37, %v1398_v30 }
  0xbc   : > { %v472_v45 = vadd.f32 %v471_v38, %v1409_v39  ;;  %v515_v46 = vmul.f32 %v1409_v39, %v1409_v39  ;;  %v516_v48 = vmul.f32 %v1412_v40, %v1412_v40  ;;  %v421_v52 = vpop.f32.mrf.mxu0  ;;  %v456_v53 = vpop.f32.mrf.mxu1 }
  0xbd   : > { %v1449_v0 = vadd.f32 %v421_v52, %v1404_v35  ;;  %v1464_v7 = vadd.f32 %v456_v53, %v1414_v41 }
  0xbe   : > { %v550_v49 = vadd.f32 %v549_v42, %v515_v46  ;;  %v473_v51 = vadd.f32 %v472_v45, %v1412_v40  ;;  %v1491_v46 = vadd.f32 %v1371_v14, %v1382_v23 }
  0xbf   : > { %v523_v12 = vmul.f32 %v1449_v0, %v1449_v0  ;;  %v524_v21 = vmul.f32 %v1464_v7, %v1464_v7 }
  0xc0   : > { %v474_v56 = vadd.f32 %v473_v51, %v1426_v47  ;;  %v551_v60 = vadd.f32 %v550_v49, %v516_v48  ;;  %v1495_v48 = vadd.f32 %v1373_v15, %v1384_v24  ;;  %v563_v49 = vadd.f32 %v526_v20, %v525_v17 }
  0xc1   : > { %v351_v58 = vpop.f32.mrf.mxu2  ;;  %v386_v59 = vpop.f32.mrf.mxu3 }
  0xc2   : > { %v1442_v61 = vadd.f32 %v351_v58, %v1396_v29  ;;  %v1445_v62 = vadd.f32 %v386_v59, %v1398_v30  ;;  %v475_v63 = vadd.f32 %v474_v56, %v1431_v50  ;;  %v552_v10 = vadd.f32 %v551_v60, %v517_v57 }
  0xc3   : > { %v531_v60 = vmul.f32 %v1491_v46, %v1491_v46 }
  0xc4   : > { %v521_v5 = vmul.f32 %v1442_v61, %v1442_v61  ;;  %v522_v6 = vmul.f32 %v1445_v62, %v1445_v62  ;;  %476 = vadd.xlane.f32.xlu0 %v475_v63  ;;  %v479_v8 = vadd.f32 %v478_v1, %v1442_v61  ;;  %v424_v11 = vpop.f32.mrf.mxu0  ;;  %v459_v16 = vpop.f32.mrf.mxu1  ;;  %v553_v36 = vadd.f32 %v552_v10, %v518_v9 }
  0xc5   : > { %v1487_v42 = vadd.f32 %v424_v11, %v1404_v35  ;;  %v1498_v51 = vadd.f32 %v459_v16, %v1414_v41  ;;  %v532_v63 = vmul.f32 %v1495_v48, %v1495_v48  ;;  %v1524_v9 = vadd.f32 %v1377_v19, %v1384_v24 }
  0xc6   : > { %v557_v13 = vadd.f32 %v556_v4, %v521_v5  ;;  %v480_v32 = vadd.f32 %v479_v8, %v1445_v62  ;;  %v1520_v8 = vadd.f32 %v1375_v18, %v1382_v23 }
  0xc7   : > { %v529_v57 = vmul.f32 %v1487_v42, %v1487_v42  ;;  %v530_v1 = vmul.f32 %v1498_v51, %v1498_v51  ;;  %v570_v18 = vadd.f32 %v532_v63, %v531_v60 }
  0xc8   : > { %v558_v22 = vadd.f32 %v557_v13, %v522_v6  ;;  %v481_v14 = vadd.f32 %v480_v32, %v1449_v0  ;;  %v492_v6 = vadd.f32 %v1495_v48, %v1491_v46 }
  0xc9   : > { %v354_v33 = vpop.f32.mrf.mxu2  ;;  %v389_v34 = vpop.f32.mrf.mxu3 }
  0xca   : > { %v1481_v37 = vadd.f32 %v354_v33, %v1396_v29  ;;  %v1484_v38 = vadd.f32 %v389_v34, %v1398_v30  ;;  %v559_v45 = vadd.f32 %v558_v22, %v523_v12  ;;  %v482_v12 = vadd.f32 %v481_v14, %v1464_v7 }
  0xcb   : > { %v537_v34 = vmul.f32 %v1520_v8, %v1520_v8 }
  0xcc   : > { %v486_v52 = vadd.f32 %v485_v31, %v1481_v37  ;;  %v527_v53 = vmul.f32 %v1481_v37, %v1481_v37  ;;  %v528_v54 = vmul.f32 %v1484_v38, %v1484_v38  ;;  %554 = vadd.xlane.f32.xlu0 %v553_v36  ;;  %v560_v55 = vadd.f32 %v559_v45, %v524_v21  ;;  %v427_v15 = vpop.f32.mrf.mxu0  ;;  %v462_v59 = vpop.f32.mrf.mxu1 }
  0xcd   : > { %v1534_v17 = vadd.f32 %v427_v15, %v1404_v35  ;;  %v1538_v19 = vadd.f32 %v462_v59, %v1414_v41  ;;  %v538_v36 = vmul.f32 %v1524_v9, %v1524_v9  ;;  %v499_v15 = vadd.f32 %v1524_v9, %v1520_v8 }
  0xce   : > { %v487_v56 = vadd.f32 %v486_v52, %v1484_v38  ;;  %561 = vadd.xlane.f32.xlu1 %v560_v55  ;;  %v564_v58 = vadd.f32 %v563_v49, %v527_v53 }
  0xcf   : > { %v535_v52 = vmul.f32 %v1534_v17, %v1534_v17  ;;  %v536_v55 = vmul.f32 %v1538_v19, %v1538_v19 }
  0xd0   : > { %v565_v4 = vadd.f32 %v564_v58, %v528_v54  ;;  %v488_v5 = vadd.f32 %v487_v56, %v1487_v42 }
  0xd1   : > { %v357_v10 = vpop.f32.mrf.mxu2  ;;  %v392_v11 = vpop.f32.mrf.mxu3 }
  0xd2   : > { %v1528_v13 = vadd.f32 %v357_v10, %v1396_v29  ;;  %v1531_v16 = vadd.f32 %v392_v11, %v1398_v30  ;;  %v566_v20 = vadd.f32 %v565_v4, %v529_v57  ;;  %v489_v21 = vadd.f32 %v488_v5, %v1498_v51 }
  0xd3   : > { %v577_v57 = vadd.f32 %v538_v36, %v537_v34  ;;  %v1568_v5 = vadd.f32 %v1386_v25, %v1382_v23 }
  0xd4   : > { %v493_v22 = vadd.f32 %v492_v6, %v1528_v13  ;;  %v533_v31 = vmul.f32 %v1528_v13, %v1528_v13  ;;  %v534_v32 = vmul.f32 %v1531_v16, %v1531_v16  ;;  %483 = vadd.xlane.f32.xlu0 %v482_v12  ;;  %v567_v33 = vadd.f32 %v566_v20, %v530_v1  ;;  %v430_v53 = vpop.f32.mrf.mxu0  ;;  %v465_v56 = vpop.f32.mrf.mxu1 }
  0xd5   : > { %v1564_v1 = vadd.f32 %v430_v53, %v1404_v35  ;;  %1926 = vst [vmem:[#allocation8_spill] sm:$0xff] %v1568_v5  ;;  %v1572_v6 = vadd.f32 %v1388_v26, %v1384_v24  ;;  %v1576_v11 = vadd.f32 %v465_v56, %v1414_v41  ;;  %v543_v26 = vmul.f32 %v1568_v5, %v1568_v5 }
  0xd6   : > { %v571_v45 = vadd.f32 %v570_v18, %v533_v31  ;;  %v494_v49 = vadd.f32 %v493_v22, %v1531_v16  ;;  %568 = vadd.xlane.f32.xlu2 %v567_v33  ;;  %490 = vadd.xlane.f32.xlu1 %v489_v21 }
  0xd7   : > { %1927 = vst [vmem:[#allocation9_spill] sm:$0xff] %v1572_v6  ;;  %v541_v24 = vmul.f32 %v1564_v1, %v1564_v1  ;;  %v544_v22 = vmul.f32 %v1572_v6, %v1572_v6  ;;  %v542_v33 = vmul.f32 %v1576_v11, %v1576_v11  ;;  %v506_v36 = vadd.f32 %v1572_v6, %v1568_v5 }
  0xd8   : > { %v495_v54 = vadd.f32 %v494_v49, %v1534_v17  ;;  %v572_v14 = vadd.f32 %v571_v45, %v534_v32 }
  0xd9   : > { %v360_v58 = vpop.f32.mrf.mxu2  ;;  %v395_v59 = vpop.f32.mrf.mxu3 }
  0xda   : > { %v1558_v60 = vadd.f32 %v360_v58, %v1396_v29  ;;  %v1561_v63 = vadd.f32 %v395_v59, %v1398_v30  ;;  %v573_v4 = vadd.f32 %v572_v14, %v535_v52  ;;  %v496_v10 = vadd.f32 %v495_v54, %v1538_v19 }
  0xdb   : > { %v584_v14 = vadd.f32 %v544_v22, %v543_v26 }
  0xdc   : > { %v500_v12 = vadd.f32 %v499_v15, %v1558_v60  ;;  %v539_v20 = vmul.f32 %v1558_v60, %v1558_v60  ;;  %v540_v18 = vmul.f32 %v1561_v63, %v1561_v63  ;;  %v574_v21 = vadd.f32 %v573_v4, %v536_v55  ;;  %v433_v32 = vpop.f32.mrf.mxu0  ;;  %v468_v56 = vpop.f32.mrf.mxu1 }
  0xdd   : > { %v1606_v58 = vadd.f32 %v433_v32, %v1404_v35 }
  0xde   : > { %v578_v23 = vadd.f32 %v577_v57, %v539_v20  ;;  %v501_v25 = vadd.f32 %v500_v12, %v1561_v63  ;;  %497 = vadd.xlane.f32.xlu1 %v496_v10  ;;  %575 = vadd.xlane.f32.xlu0 %v574_v21  ;;  %v1612_v10 = vadd.f32 %v468_v56, %v1414_v41 }
  0xdf   : > { %1930 = vst [vmem:[#allocation12_spill] sm:$0xff] %v1606_v58  ;;  %v547_v20 = vmul.f32 %v1606_v58, %v1606_v58 }
  0xe0   : > { %v502_v31 = vadd.f32 %v501_v25, %v1564_v1  ;;  %v579_v34 = vadd.f32 %v578_v23, %v540_v18  ;;  %1931 = vst [vmem:[#allocation13_spill] sm:$0xff] %v1612_v10  ;;  %v548_v21 = vmul.f32 %v1612_v10, %v1612_v10 }
  0xe1   : > { %v363_v45 = vpop.f32.mrf.mxu2  ;;  %v398_v49 = vpop.f32.mrf.mxu3 }
  0xe2   : > { %v1596_v52 = vadd.f32 %v363_v45, %v1396_v29  ;;  %v1599_v53 = vadd.f32 %v398_v49, %v1398_v30  ;;  %v503_v54 = vadd.f32 %v502_v31, %v1576_v11  ;;  %v580_v55 = vadd.f32 %v579_v34, %v541_v24 }
  0xe4   : > { %1928 = vst [vmem:[#allocation10_spill] sm:$0xff] %v1596_v52  ;;  %v507_v15 = vadd.f32 %v506_v36, %v1596_v52  ;;  %v545_v57 = vmul.f32 %v1596_v52, %v1596_v52  ;;  %504 = vadd.xlane.f32.xlu2 %v503_v54  ;;  %v581_v59 = vadd.f32 %v580_v55, %v542_v33 }
  0xe5   : > { %1929 = vst [vmem:[#allocation11_spill] sm:$0xff] %v1599_v53  ;;  %v546_v30 = vmul.f32 %v1599_v53, %v1599_v53 }
  0xe6   : > { %v585_v29 = vadd.f32 %v584_v14, %v545_v57  ;;  %v508_v4 = vadd.f32 %v507_v15, %v1599_v53  ;;  %582 = vadd.xlane.f32.xlu1 %v581_v59 }
  0xe8   : > { %v509_v12 = vadd.f32 %v508_v4, %v1606_v58  ;;  %v586_v35 = vadd.f32 %v585_v29, %v546_v30  ;;  %v1052_v29 = vld [vmem:[%s1915_s2 + $0x1] ss:$2 sm:$0x3f]  ;;  %v813_v58 = vld [vmem:[#allocation2 + $0x18] sm:$0xff] }
  0xea   : > { %v510_v18 = vadd.f32 %v509_v12, %v1612_v10  ;;  %v587_v23 = vadd.f32 %v586_v35, %v547_v20 }
  0xec   : > { %511 = vadd.xlane.f32.xlu2 %v510_v18  ;;  %v588_v25 = vadd.f32 %v587_v23, %v548_v21  ;;  %v1637_v21 = vperm.slane %v1052_v29, 0  ;;  %v1639_v23 = vperm.slane %v1052_v29, 1 }
  0xf4   : > { %589 = vadd.xlane.f32.xlu2 %v588_v25  ;;  %v1641_v25 = vperm.slane %v1052_v29, 2 }
 0x137   : > { %v477_v24 = vpop.xlane.xlu0 %476 }
 0x138   : > { %v1620_v26 = vmul.f32 0.0013020834, %v477_v24 }
 0x13a   : > { %v603_v22 = vmul.f32 %v1620_v26, %v1620_v26 }
 0x13f   : > { %v555_v41 = vpop.xlane.xlu0 %554 }
 0x140   : > { %v597_v31 = vmul.f32 0.0013020834, %v555_v41 }
 0x141   : > { %v562_v32 = vpop.xlane.xlu1 %561 }
 0x142   : > { %v609_v33 = vsub.f32 %v597_v31, %v603_v22  ;;  %v598_v55 = vmul.f32 0.0013020834, %v562_v32  ;;  %v1643_v31 = vperm.slane %v1052_v29, 3 }
 0x144   : > { %v615_v34 = vmax.f32 %v609_v33, 0.0 }
 0x146   : > { %v657_v36 = vadd.f32 1e-05, %v615_v34  ;;  %v621_v34 = vsub.f32 %v1391_v27, %v1620_v26  ;;  %v624_v27 = vsub.f32 %v1412_v40, %v1620_v26 }
 0x147   : > { %v484_v45 = vpop.xlane.xlu0 %483 }
 0x148   : > { %1115 = vrsqrt.f32 %v657_v36  ;;  %v1624_v49 = vmul.f32 0.0013020834, %v484_v45  ;;  %v1650_v45 = vperm.slane %v1052_v29, 4  ;;  %vm669_vm2 = vweird.f32 %v657_v36 }
 0x149   : > { %v491_v54 = vpop.xlane.xlu1 %490  ;;  %v569_v56 = vpop.xlane.xlu2 %568 }
 0x14a   : > { %v604_v14 = vmul.f32 %v1624_v49, %v1624_v49  ;;  %v1628_v57 = vmul.f32 0.0013020834, %v491_v54  ;;  %v599_v30 = vmul.f32 0.0013020834, %v569_v56  ;;  %v1652_v54 = vperm.slane %v1052_v29, 5 }
 0x14b   : > { %v625_v29 = vsub.f32 %v1426_v47, %v1620_v26  ;;  %v810_v47 = vld [vmem:[#allocation2] sm:$0xff] }
 0x14c   : > { %v610_v15 = vsub.f32 %v598_v55, %v604_v14  ;;  %v605_v12 = vmul.f32 %v1628_v57, %v1628_v57  ;;  %v622_v14 = vsub.f32 %v1394_v28, %v1620_v26  ;;  %v626_v28 = vsub.f32 %v1431_v50, %v1620_v26 }
 0x14e   : > { %v1116_v59 = vpop.eup %1115  ;;  %v616_v4 = vmax.f32 %v610_v15, 0.0  ;;  %v611_v35 = vsub.f32 %v599_v30, %v605_v12  ;;  %v623_v30 = vsub.f32 %v1409_v39, %v1620_v26  ;;  %v811_v26 = vld [vmem:[#allocation2 + $0x8] sm:$0xff] }
 0x14f   : > { %v664_v20 = vmul.f32 %v1116_v59, %v657_v36  ;;  %vm670_vm1 = vweird.f32 %v1116_v59 }
 0x150   : > { %v1635_v18 = vadd.f32 1e-05, %v616_v4  ;;  %v617_v32 = vmax.f32 %v611_v35, 0.0  ;;  %vm671_vm3 = vmor %vm669_vm2, %vm670_vm1 }
 0x151   : > { %v665_v24 = vmul.f32 %v1116_v59, %v664_v20  ;;  %v498_v41 = vpop.xlane.xlu1 %497  ;;  %v576_v22 = vpop.xlane.xlu0 %575 }
 0x152   : > { %1117 = vrsqrt.f32 %v1635_v18  ;;  %v1646_v33 = vmul.f32 0.0013020834, %v498_v41  ;;  %v1656_v56 = vadd.f32 1e-05, %v617_v32  ;;  %v600_v4 = vmul.f32 0.0013020834, %v576_v22 }
 0x153   : > { %v666_v55 = vmul.f32 0.5, %v665_v24  ;;  %vm679_vm5 = vweird.f32 %v1635_v18 }
 0x154   : > { %v606_v15 = vmul.f32 %v1646_v33, %v1646_v33  ;;  %1119 = vrsqrt.f32 %v1656_v56  ;;  %vm689_vm8 = vweird.f32 %v1656_v56 }
 0x155   : > { %v667_v12 = vsub.f32 1.5, %v666_v55 }
 0x156   : > { %v612_v20 = vsub.f32 %v600_v4, %v606_v15 }
 0x157   : > { %v668_v35 = vmul.f32 %v1116_v59, %v667_v12  ;;  %v505_v22 = vpop.xlane.xlu2 %504 }
 0x158   : > { %v1674_v24 = vpop.eup %1117  ;;  %v618_v41 = vmax.f32 %v612_v20, 0.0  ;;  %v812_v20 = vld [vmem:[#allocation2 + $0x10] sm:$0xff]  ;;  %v1705_v6 = vmul.f32 0.0013020834, %v505_v22  ;;  %v638_v22 = vsub.f32 %v1498_v51, %v1628_v57  ;;  %v1934_v51 = vsub.f32 %v1442_v61, %v1624_v49 }
 0x159   : > { %v672_v36 = vsel %vm671_vm3, %v1116_v59, %v668_v35  ;;  %v674_v32 = vmul.f32 %v1674_v24, %v1635_v18  ;;  %vm680_vm4 = vweird.f32 %v1674_v24 }
 0x15a   : > { %v723_v15 = vmul.f32 %v672_v36, %v621_v34  ;;  %v724_v4 = vmul.f32 %v672_v36, %v622_v14  ;;  %v725_v12 = vmul.f32 %v672_v36, %v623_v30  ;;  %v726_v50 = vmul.f32 %v672_v36, %v624_v27  ;;  %v1695_v10 = vpop.eup %1119  ;;  %v814_v27 = vld [vmem:[#allocation2 + $0x20] sm:$0xff]  ;;  %vm681_vm6 = vmor %vm679_vm5, %vm680_vm4 }
 0x15b   : > { %v727_v40 = vmul.f32 %v672_v36, %v625_v29  ;;  %v728_v39 = vmul.f32 %v672_v36, %v626_v28  ;;  %v675_v59 = vmul.f32 %v1674_v24, %v674_v32  ;;  %v1693_v35 = vadd.f32 1e-05, %v618_v41  ;;  %v815_v32 = vld [vmem:[#allocation2 + $0x28] sm:$0xff] }
 0x15c   : > { %v774_v53 = vmul.f32 %v1637_v21, %v723_v15  ;;  %v775_v34 = vmul.f32 %v1639_v23, %v724_v4  ;;  %v776_v14 = vmul.f32 %v1641_v25, %v725_v12  ;;  %v777_v30 = vmul.f32 %v1643_v31, %v726_v50 }
 0x15d   : > { %v778_v29 = vmul.f32 %v1650_v45, %v727_v40  ;;  %v779_v28 = vmul.f32 %v1652_v54, %v728_v39  ;;  %v676_v41 = vmul.f32 0.5, %v675_v59  ;;  %v684_v36 = vmul.f32 %v1695_v10, %v1656_v56 }
 0x15e   : > { %v846_v55 = vadd.f32 %v810_v47, %v774_v53  ;;  %v847_v52 = vadd.f32 %v811_v26, %v775_v34  ;;  %v848_v15 = vadd.f32 %v812_v20, %v776_v14  ;;  %v849_v4 = vadd.f32 %v813_v58, %v777_v30  ;;  %v583_v58 = vpop.xlane.xlu1 %582 }
 0x15f   : > { %v677_v12 = vsub.f32 1.5, %v676_v41  ;;  %v685_v50 = vmul.f32 %v1695_v10, %v684_v36  ;;  %v850_v5 = vadd.f32 %v814_v27, %v778_v29  ;;  %v634_v53 = vsub.f32 %v1457_v3, %v1628_v57  ;;  %v816_v27 = vld [vmem:[#allocation2 + $0x30] sm:$0xff]  ;;  %v817_v29 = vld [vmem:[#allocation2 + $0x38] sm:$0xff]  ;;  %v512_v61 = vpop.xlane.xlu2 %511 }
 0x160   : > { %882 = vst [vmem:[%s1710_s14] sm:$0xff] %v846_v55  ;;  %v635_v39 = vsub.f32 %v1481_v37, %v1628_v57  ;;  %1121 = vrsqrt.f32 %v1693_v35  ;;  %v851_v40 = vadd.f32 %v815_v32, %v779_v28  ;;  %v636_v3 = vsub.f32 %v1484_v38, %v1628_v57 }
 0x161   : > { %883 = vst [vmem:[%s1710_s14 + $0x8] sm:$0xff] %v847_v52  ;;  %v678_v47 = vmul.f32 %v1674_v24, %v677_v12  ;;  %v686_v26 = vmul.f32 0.5, %v685_v50  ;;  %v637_v37 = vsub.f32 %v1487_v42, %v1628_v57  ;;  %vm690_vm7 = vweird.f32 %v1695_v10 }
 0x162   : > { %884 = vst [vmem:[%s1710_s14 + $0x10] sm:$0xff] %v848_v15  ;;  %v607_v55 = vmul.f32 %v1705_v6, %v1705_v6  ;;  %v601_v20 = vmul.f32 0.0013020834, %v583_v58  ;;  %v1932_v38 = vsub.f32 %v1417_v43, %v1624_v49  ;;  %v1933_v42 = vsub.f32 %v1420_v44, %v1624_v49  ;;  %v820_v15 = vld [vmem:[#allocation2 + $0x50] sm:$0xff]  ;;  %vm691_vm9 = vmor %vm689_vm8, %vm690_vm7 }
 0x163   : > { %885 = vst [vmem:[%s1710_s14 + $0x18] sm:$0xff] %v849_v4  ;;  %v682_v52 = vsel %vm681_vm6, %v1674_v24, %v678_v47  ;;  %v687_v18 = vsub.f32 1.5, %v686_v26  ;;  %v1935_v24 = vsub.f32 %v1445_v62, %v1624_v49  ;;  %v1936_v43 = vsub.f32 %v1449_v0, %v1624_v49  ;;  %v819_v62 = vld [vmem:[#allocation2 + $0x48] sm:$0xff] }
 0x164   : > { %886 = vst [vmem:[%s1710_s14 + $0x20] sm:$0xff] %v850_v5  ;;  %v729_v59 = vmul.f32 %v682_v52, %v1932_v38  ;;  %v730_v34 = vmul.f32 %v682_v52, %v1933_v42  ;;  %v731_v14 = vmul.f32 %v682_v52, %v1934_v51  ;;  %v818_v5 = vld [vmem:[#allocation2 + $0x40] sm:$0xff]  ;;  %v1937_v44 = vsub.f32 %v1464_v7, %v1624_v49 }
 0x165   : > { %v732_v30 = vmul.f32 %v682_v52, %v1935_v24  ;;  %887 = vst [vmem:[%s1710_s14 + $0x28] sm:$0xff] %v851_v40  ;;  %v733_v28 = vmul.f32 %v682_v52, %v1936_v43  ;;  %v688_v36 = vmul.f32 %v1695_v10, %v687_v18  ;;  %v821_v40 = vld [vmem:[#allocation2 + $0x58] sm:$0xff]  ;;  %v613_v18 = vsub.f32 %v601_v20, %v607_v55 }
 0x166   : > { %v734_v41 = vmul.f32 %v682_v52, %v1937_v44  ;;  %v1757_v32 = vpop.eup %1121  ;;  %v780_v4 = vmul.f32 %v1637_v21, %v729_v59  ;;  %v781_v12 = vmul.f32 %v1639_v23, %v730_v34  ;;  %v782_v0 = vmul.f32 %v1641_v25, %v731_v14  ;;  %v822_v14 = vld [vmem:[#allocation2 + $0x60] sm:$0xff] }
 0x167   : > { %v783_v50 = vmul.f32 %v1643_v31, %v732_v30  ;;  %v784_v7 = vmul.f32 %v1650_v45, %v733_v28  ;;  %v692_v56 = vsel %vm691_vm9, %v1695_v10, %v688_v36  ;;  %v694_v58 = vmul.f32 %v1757_v32, %v1693_v35  ;;  %v823_v10 = vld [vmem:[#allocation2 + $0x68] sm:$0xff] }
 0x168   : > { %v785_v49 = vmul.f32 %v1652_v54, %v734_v41  ;;  %v852_v47 = vadd.f32 %v816_v27, %v780_v4  ;;  %v853_v26 = vadd.f32 %v817_v29, %v781_v12  ;;  %v854_v52 = vadd.f32 %v818_v5, %v782_v0  ;;  %v824_v29 = vld [vmem:[#allocation2 + $0x70] sm:$0xff] }
 0x169   : > { %v855_v38 = vadd.f32 %v819_v62, %v783_v50  ;;  %v856_v59 = vadd.f32 %v820_v15, %v784_v7  ;;  %v1938_v42 = vsub.f32 %v1454_v2, %v1628_v57  ;;  %v736_v51 = vmul.f32 %v692_v56, %v634_v53  ;;  %v825_v57 = vld [vmem:[#allocation2 + $0x78] sm:$0xff]  ;;  %v827_v62 = vld [vmem:[#allocation2 + $0x88] sm:$0xff]  ;;  %v590_v7 = vpop.xlane.xlu2 %589 }
 0x16a   : > { %888 = vst [vmem:[%s1710_s14 + $0x30] sm:$0xff] %v852_v47  ;;  %v737_v24 = vmul.f32 %v692_v56, %v635_v39  ;;  %v738_v30 = vmul.f32 %v692_v56, %v636_v3  ;;  %v739_v43 = vmul.f32 %v692_v56, %v637_v37  ;;  %v740_v27 = vmul.f32 %v692_v56, %v638_v22  ;;  %v826_v22 = vld [vmem:[#allocation2 + $0x80] sm:$0xff] }
 0x16b   : > { %v735_v34 = vmul.f32 %v692_v56, %v1938_v42  ;;  %v857_v28 = vadd.f32 %v821_v40, %v785_v49  ;;  %889 = vst [vmem:[%s1710_s14 + $0x38] sm:$0xff] %v853_v26  ;;  %v787_v20 = vmul.f32 %v1639_v23, %v736_v51  ;;  %v695_v2 = vmul.f32 %v1757_v32, %v694_v58  ;;  %v828_v42 = vld [vmem:[#allocation2 + $0x90] sm:$0xff]  ;;  %v830_v51 = vld [vmem:[#allocation2 + $0xa0] sm:$0xff] }
 0x16c   : > { %890 = vst [vmem:[%s1710_s14 + $0x40] sm:$0xff] %v854_v52  ;;  %v788_v53 = vmul.f32 %v1641_v25, %v737_v24  ;;  %v789_v39 = vmul.f32 %v1643_v31, %v738_v30  ;;  %v790_v3 = vmul.f32 %v1650_v45, %v739_v43  ;;  %v791_v37 = vmul.f32 %v1652_v54, %v740_v27  ;;  %v831_v24 = vld [vmem:[#allocation2 + $0xa8] sm:$0xff]  ;;  %v832_v27 = vld [vmem:[#allocation2 + $0xb0] sm:$0xff] }
 0x16d   : > { %v786_v55 = vmul.f32 %v1637_v21, %v735_v34  ;;  %891 = vst [vmem:[%s1710_s14 + $0x48] sm:$0xff] %v855_v38  ;;  %v859_v44 = vadd.f32 %v823_v10, %v787_v20  ;;  %v696_v41 = vmul.f32 0.5, %v695_v2  ;;  %v619_v36 = vmax.f32 %v613_v18, 0.0  ;;  %v829_v34 = vld [vmem:[#allocation2 + $0x98] sm:$0xff] }
 0x16e   : > { %892 = vst [vmem:[%s1710_s14 + $0x50] sm:$0xff] %v856_v59  ;;  %v860_v15 = vadd.f32 %v824_v29, %v788_v53  ;;  %v1785_v4 = vmul.f32 0.0013020834, %v512_v61  ;;  %v861_v12 = vadd.f32 %v825_v57, %v789_v39  ;;  %vm700_vm10 = vweird.f32 %v1757_v32  ;;  %v833_v20 = vld [vmem:[#allocation2 + $0xb8] sm:$0xff] }
 0x16f   : > { %v858_v5 = vadd.f32 %v822_v14, %v786_v55  ;;  %893 = vst [vmem:[%s1710_s14 + $0x58] sm:$0xff] %v857_v28  ;;  %v697_v0 = vsub.f32 1.5, %v696_v41  ;;  %v1789_v50 = vadd.f32 1e-05, %v619_v36  ;;  %v862_v49 = vadd.f32 %v826_v22, %v790_v3 }
 0x170   : > { %v639_v56 = vsub.f32 %v1491_v46, %v1646_v33  ;;  %v863_v58 = vadd.f32 %v827_v62, %v791_v37  ;;  %895 = vst [vmem:[%s1710_s14 + $0x68] sm:$0xff] %v859_v44  ;;  %vm699_vm11 = vweird.f32 %v1693_v35  ;;  %v640_v40 = vsub.f32 %v1495_v48, %v1646_v33 }
 0x171   : > { %894 = vst [vmem:[%s1710_s14 + $0x60] sm:$0xff] %v858_v5  ;;  %v698_v61 = vmul.f32 %v1757_v32, %v697_v0  ;;  %1123 = vrsqrt.f32 %v1789_v50  ;;  %v641_v47 = vsub.f32 %v1528_v13, %v1646_v33  ;;  %v642_v46 = vsub.f32 %v1531_v16, %v1646_v33  ;;  %vm701_vm12 = vmor %vm699_vm11, %vm700_vm10 }
 0x172   : > { %896 = vst [vmem:[%s1710_s14 + $0x70] sm:$0xff] %v860_v15  ;;  %v602_v26 = vmul.f32 0.0013020834, %v590_v7  ;;  %v643_v35 = vsub.f32 %v1534_v17, %v1646_v33  ;;  %v644_v52 = vsub.f32 %v1538_v19, %v1646_v33  ;;  %v608_v48 = vmul.f32 %v1785_v4, %v1785_v4 }
 0x173   : > { %897 = vst [vmem:[%s1710_s14 + $0x78] sm:$0xff] %v861_v12  ;;  %v702_v18 = vsel %vm701_vm12, %v1757_v32, %v698_v61  ;;  %vm709_vm14 = vweird.f32 %v1789_v50  ;;  %v645_v12 = vsub.f32 %v1520_v8, %v1705_v6  ;;  %v646_v0 = vsub.f32 %v1524_v9, %v1705_v6  ;;  %v834_v9 = vld [vmem:[#allocation2 + $0xc0] sm:$0xff] }
 0x174   : > { %898 = vst [vmem:[%s1710_s14 + $0x80] sm:$0xff] %v862_v49  ;;  %v741_v13 = vmul.f32 %v702_v18, %v639_v56  ;;  %v742_v38 = vmul.f32 %v702_v18, %v640_v40  ;;  %v743_v16 = vmul.f32 %v702_v18, %v641_v47  ;;  %v744_v59 = vmul.f32 %v702_v18, %v642_v46 }
 0x175   : > { %899 = vst [vmem:[%s1710_s14 + $0x88] sm:$0xff] %v863_v58  ;;  %v745_v14 = vmul.f32 %v702_v18, %v643_v35  ;;  %v746_v10 = vmul.f32 %v702_v18, %v644_v52  ;;  %v614_v17 = vsub.f32 %v602_v26, %v608_v48  ;;  %v647_v7 = vsub.f32 %v1558_v60, %v1705_v6  ;;  %v835_v26 = vld [vmem:[#allocation2 + $0xc8] sm:$0xff]  ;;  %v836_v35 = vld [vmem:[#allocation2 + $0xd0] sm:$0xff] }
 0x176   : > { %v792_v19 = vmul.f32 %v1637_v21, %v741_v13  ;;  %v793_v33 = vmul.f32 %v1639_v23, %v742_v38  ;;  %v794_v32 = vmul.f32 %v1641_v25, %v743_v16  ;;  %v795_v30 = vmul.f32 %v1643_v31, %v744_v59  ;;  %v838_v13 = vld [vmem:[#allocation2 + $0xe0] sm:$0xff] }
 0x177   : > { %v1124_v43 = vpop.eup %1123  ;;  %v796_v28 = vmul.f32 %v1650_v45, %v745_v14  ;;  %v797_v29 = vmul.f32 %v1652_v54, %v746_v10  ;;  %v620_v55 = vmax.f32 %v614_v17, 0.0  ;;  %v648_v49 = vsub.f32 %v1561_v63, %v1705_v6  ;;  %v837_v63 = vld [vmem:[#allocation2 + $0xd8] sm:$0xff] }
 0x178   : > { %v864_v2 = vadd.f32 %v828_v42, %v792_v19  ;;  %v865_v57 = vadd.f32 %v829_v34, %v793_v33  ;;  %v866_v53 = vadd.f32 %v830_v51, %v794_v32  ;;  %v867_v39 = vadd.f32 %v831_v24, %v795_v30  ;;  %v839_v42 = vld [vmem:[#allocation2 + $0xe8] sm:$0xff]  ;;  %v1939_v32 = vld [vmem:[#allocation8_spill] sm:$0xff] }
 0x179   : > { %v704_v3 = vmul.f32 %v1124_v43, %v1789_v50  ;;  %v868_v37 = vadd.f32 %v832_v27, %v796_v28  ;;  %v662_v22 = vadd.f32 1e-05, %v620_v55  ;;  %v869_v5 = vadd.f32 %v833_v20, %v797_v29  ;;  %v1941_v28 = vld [vmem:[#allocation10_spill] sm:$0xff]  ;;  %v1942_v55 = vld [vmem:[#allocation11_spill] sm:$0xff] }
 0x17a   : > { %900 = vst [vmem:[%s1710_s14 + $0x90] sm:$0xff] %v864_v2  ;;  %vm710_vm13 = vweird.f32 %v1124_v43  ;;  %v649_v56 = vsub.f32 %v1564_v1, %v1705_v6  ;;  %v650_v50 = vsub.f32 %v1576_v11, %v1705_v6  ;;  %v651_v30 = vsub.f32 %v1939_v32, %v1785_v4  ;;  %v1943_v2 = vld [vmem:[#allocation12_spill] sm:$0xff] }
 0x17b   : > { %901 = vst [vmem:[%s1710_s14 + $0x98] sm:$0xff] %v865_v57  ;;  %v705_v44 = vmul.f32 %v1124_v43, %v704_v3  ;;  %1125 = vrsqrt.f32 %v662_v22  ;;  %vm711_vm15 = vmor %vm709_vm14, %vm710_vm13  ;;  %vm719_vm1 = vweird.f32 %v662_v22  ;;  %v653_v29 = vsub.f32 %v1941_v28, %v1785_v4 }
 0x17c   : > { %902 = vst [vmem:[%s1710_s14 + $0xa0] sm:$0xff] %v866_v53  ;;  %v654_v20 = vsub.f32 %v1942_v55, %v1785_v4  ;;  %v655_v57 = vsub.f32 %v1943_v2, %v1785_v4  ;;  %v1944_v53 = vld [vmem:[#allocation13_spill] sm:$0xff] }
 0x17d   : > { %903 = vst [vmem:[%s1710_s14 + $0xa8] sm:$0xff] %v867_v39  ;;  %v706_v41 = vmul.f32 0.5, %v705_v44  ;;  %v656_v39 = vsub.f32 %v1944_v53, %v1785_v4 }
 0x17e   : > { %904 = vst [vmem:[%s1710_s14 + $0xb0] sm:$0xff] %v868_v37 }
 0x17f   : > { %905 = vst [vmem:[%s1710_s14 + $0xb8] sm:$0xff] %v869_v5  ;;  %v707_v36 = vsub.f32 1.5, %v706_v41  ;;  %v840_v41 = vld [vmem:[#allocation2 + $0xf0] sm:$0xff] }
 0x181   : > { %v708_v62 = vmul.f32 %v1124_v43, %v707_v36  ;;  %v1126_v15 = vpop.eup %1125  ;;  %v841_v36 = vld [vmem:[#allocation2 + $0xf8] sm:$0xff] }
 0x182   : > { %v714_v61 = vmul.f32 %v1126_v15, %v662_v22  ;;  %vm720_vm0 = vweird.f32 %v1126_v15 }
 0x183   : > { %v712_v58 = vsel %vm711_vm15, %v1124_v43, %v708_v62  ;;  %v1940_v43 = vld [vmem:[#allocation9_spill] sm:$0xff]  ;;  %vm721_vm2 = vmor %vm719_vm1, %vm720_vm0  ;;  %v842_v62 = vld [vmem:[#allocation2 + $0x100] sm:$0xff] }
 0x184   : > { %v747_v40 = vmul.f32 %v712_v58, %v645_v12  ;;  %v748_v8 = vmul.f32 %v712_v58, %v646_v0  ;;  %v749_v47 = vmul.f32 %v712_v58, %v647_v7  ;;  %v750_v46 = vmul.f32 %v712_v58, %v648_v49  ;;  %v843_v7 = vld [vmem:[#allocation2 + $0x108] sm:$0xff] }
 0x185   : > { %v751_v60 = vmul.f32 %v712_v58, %v649_v56  ;;  %v752_v52 = vmul.f32 %v712_v58, %v650_v50  ;;  %v715_v18 = vmul.f32 %v1126_v15, %v714_v61  ;;  %v652_v27 = vsub.f32 %v1940_v43, %v1785_v4  ;;  %v844_v50 = vld [vmem:[#allocation2 + $0x110] sm:$0xff] }
 0x186   : > { %v798_v48 = vmul.f32 %v1637_v21, %v747_v40  ;;  %v799_v1 = vmul.f32 %v1639_v23, %v748_v8  ;;  %v800_v6 = vmul.f32 %v1641_v25, %v749_v47  ;;  %v801_v11 = vmul.f32 %v1643_v31, %v750_v46 }
 0x187   : > { %v802_v38 = vmul.f32 %v1650_v45, %v751_v60  ;;  %v803_v16 = vmul.f32 %v1652_v54, %v752_v52  ;;  %v716_v59 = vmul.f32 0.5, %v715_v18 }
 0x188   : > { %v870_v34 = vadd.f32 %v834_v9, %v798_v48  ;;  %v871_v51 = vadd.f32 %v835_v26, %v799_v1  ;;  %v872_v14 = vadd.f32 %v836_v35, %v800_v6  ;;  %v873_v10 = vadd.f32 %v837_v63, %v801_v11 }
 0x189   : > { %v717_v17 = vsub.f32 1.5, %v716_v59  ;;  %v874_v24 = vadd.f32 %v838_v13, %v802_v38  ;;  %v875_v19 = vadd.f32 %v839_v42, %v803_v16 }
 0x18a   : > { %906 = vst [vmem:[%s1710_s14 + $0xc0] sm:$0xff] %v870_v34 }
 0x18b   : > { %907 = vst [vmem:[%s1710_s14 + $0xc8] sm:$0xff] %v871_v51  ;;  %v718_v33 = vmul.f32 %v1126_v15, %v717_v17 }
 0x18c   : > { %908 = vst [vmem:[%s1710_s14 + $0xd0] sm:$0xff] %v872_v14 }
 0x18d   : > { %909 = vst [vmem:[%s1710_s14 + $0xd8] sm:$0xff] %v873_v10  ;;  %v722_v3 = vsel %vm721_vm2, %v1126_v15, %v718_v33 }
 0x18e   : > { %910 = vst [vmem:[%s1710_s14 + $0xe0] sm:$0xff] %v874_v24  ;;  %v753_v37 = vmul.f32 %v722_v3, %v651_v30  ;;  %v754_v22 = vmul.f32 %v722_v3, %v652_v27  ;;  %v755_v5 = vmul.f32 %v722_v3, %v653_v29  ;;  %v756_v44 = vmul.f32 %v722_v3, %v654_v20 }
 0x18f   : > { %911 = vst [vmem:[%s1710_s14 + $0xe8] sm:$0xff] %v875_v19  ;;  %v757_v12 = vmul.f32 %v722_v3, %v655_v57  ;;  %v758_v0 = vmul.f32 %v722_v3, %v656_v39 }
 0x190   : > { %v804_v49 = vmul.f32 %v1637_v21, %v753_v37  ;;  %v805_v4 = vmul.f32 %v1639_v23, %v754_v22  ;;  %v806_v15 = vmul.f32 %v1641_v25, %v755_v5  ;;  %v807_v56 = vmul.f32 %v1643_v31, %v756_v44  ;;  %v845_v21 = vld [vmem:[#allocation2 + $0x118] sm:$0xff] }
 0x191   : > { %v808_v58 = vmul.f32 %v1650_v45, %v757_v12  ;;  %v809_v61 = vmul.f32 %v1652_v54, %v758_v0 }
 0x192   : > { %v876_v23 = vadd.f32 %v840_v41, %v804_v49  ;;  %v877_v25 = vadd.f32 %v841_v36, %v805_v4  ;;  %v878_v40 = vadd.f32 %v842_v62, %v806_v15  ;;  %v879_v8 = vadd.f32 %v843_v7, %v807_v56 }
 0x193   : > { %v880_v31 = vadd.f32 %v844_v50, %v808_v58  ;;  %v881_v45 = vadd.f32 %v845_v21, %v809_v61 }
 0x194   : > { %912 = vst [vmem:[%s1710_s14 + $0xf0] sm:$0xff] %v876_v23 }
 0x195   : > { %913 = vst [vmem:[%s1710_s14 + $0xf8] sm:$0xff] %v877_v25 }
 0x196   : > { %914 = vst [vmem:[%s1710_s14 + $0x100] sm:$0xff] %v878_v40 }
 0x197   : > { %915 = vst [vmem:[%s1710_s14 + $0x108] sm:$0xff] %v879_v8 }
 0x198   : > { %916 = vst [vmem:[%s1710_s14 + $0x110] sm:$0xff] %v880_v31 }
 0x199   : > { %917 = vst [vmem:[%s1710_s14 + $0x118] sm:$0xff] %v881_v45 }
 0x19a   : > { %1184 = shalt.err (!%p1181_p8)
}
 0x19b   : > { %s1228_s11 = smov 768   ;;  %s1229_s12 = smov 48  }
 0x19c   : > { %1064 = dma.vmem_to_hbm [thread:$0]  (%p1293_p5), %s933_s27, 4608, %s935_s28, %s919_s29, %s1228_s11, %s1228_s11, %s1229_s12  }
 0x19d PF: > { %p1077_p9 = scmp.ge.s32.totalorder %s1223_s18, 2  ;;  %s949_s13 = sand.u32 1, %s1211_s15  }
 0x19e   : > { %s950_s14 = scalar_lea.sflag [#allocation4], %s949_s13 }
 0x19f   : > { %p1071_p10 = pnand %p1077_p9, %p1297_p6 }
 0x1a1   : > { %p1072_p11 = pneg %p1071_p10 }
 0x1a3   : > { %1206 = dma.done.wait (%p1072_p11), %s950_s14, 4608  }
 0x1a4   : > { %1208 = vsyncadd (%p1072_p11), %s950_s14, 4294962688  ;;  %p15_p12 = scmp.ge.s32.totalorder %s1280_s21, 4   ;;  %s1945_s15 = smov %s1215_s16 }
 0x1a5   : > { %s1946_s16 = smov %s1219_s17  ;;  %s1947_s17 = smov %s1291_s24 }
 0x1a6   : > { %s1948_s18 = smov %s1280_s21  ;;  %17 = sbr.rel (!%p15_p12) target bundleno = 4 (0x4), region = 77 }
 0x1ab   :  { %956 = vsyncpa [#allocation3], 1 }
 0x1ac   :  { %958 = vsyncpa [#allocation3 + $0x1], 1 }
 0x1ad   :  { %959 = vsyncpa [#allocation4], 1 }
 0x1ae   :  { %961 = vsyncpa [#allocation4 + $0x1], 1 }

</bundles_post_ra>
